<compile_context>
chip_gen: v5e
topology: v5e:2x2
jax: 0.10.0
libtpu: 0.0.40
codegen_flags: <defaults>
</compile_context>

<pallas_src>
import jax
import jax.numpy as jnp
from jax.experimental import pallas as pl
from jax.experimental.pallas import tpu as pltpu


_LANE = 128
_VMEM_LIMIT = None


def _round_up(x, m):
    return ((x + m - 1) // m) * m


def _vmem_limit_bytes():
    """Generation-aware VMEM limit (~75% of per-core capacity, clamped)."""
    global _VMEM_LIMIT
    if _VMEM_LIMIT is None:
        cap = None
        try:
            cap = pltpu.get_tpu_info().vmem_capacity_bytes
        except Exception:
            cap = None
        if not cap:
            cap = 64 * 1024 * 1024          # conservative fallback (v7x per-core VMEM)
        _VMEM_LIMIT = int(min(max(cap * 3 // 4, 32 * 1024 * 1024),
                              100 * 1024 * 1024))
    return _VMEM_LIMIT


def _compiler_params(dimension_semantics):
    return pltpu.CompilerParams(dimension_semantics=dimension_semantics,
                                vmem_limit_bytes=_vmem_limit_bytes())


# --------------------------------------------------------------------------- #
# 1x1 convolution: tiled pointwise matmul over the flattened activation.
# --------------------------------------------------------------------------- #

def _conv1x1_kernel(x_ref, w_ref, b_ref, o_ref):
    # x: (TM, Cin)   w: (Cin, Cp)   b: (1, Cp) f32   o: (TM, Cp)
    acc = jnp.dot(x_ref[...].astype(w_ref.dtype), w_ref[...],
                  preferred_element_type=jnp.float32)
    o_ref[...] = (acc + b_ref[...]).astype(o_ref.dtype)


def _conv1x1_row_tile(M, Cin, Cp, act_itemsize, vmem_limit):
    """Row tile for the pointwise matmul: as large as comfortably fits VMEM
    (HBM-bound kernel -> big tiles amortize the ~0.35us per-grid-step cost)."""
    budget = vmem_limit * 3 // 5
    per_row = (Cin + Cp) * act_itemsize * 2 + Cp * 4          # dbl-buffered in/out + f32 acc
    fixed = Cin * Cp * act_itemsize * 2 + Cp * 4 * 2          # weights + bias (pipeline bufs)
    rows = (budget - fixed) // max(per_row, 1)
    rows = int(max(256, min(rows, 4096)))
    rows -= rows % 8                                          # sublane-aligned row tile
    return M if M <= rows else rows


def conv1x1(x_nhwc, w_io, b, out_dtype):
    """1x1 conv.  x (N,H,W,Cin), w (Cin,Cp), b (Cp,) f32 -> (N,H,W,Cp)."""
    N, H, W, Cin = x_nhwc.shape
    Cp = w_io.shape[1]
    M = N * H * W
    x2d = x_nhwc.reshape(M, Cin)
    tm = _conv1x1_row_tile(M, Cin, Cp, jnp.dtype(out_dtype).itemsize,
                           _vmem_limit_bytes())
    out2d = pl.pallas_call(
        _conv1x1_kernel,
        grid=(pl.cdiv(M, tm),),
        in_specs=[
            pl.BlockSpec((tm, Cin), lambda i: (i, 0)),
            pl.BlockSpec((Cin, Cp), lambda i: (0, 0)),   # resident weights
            pl.BlockSpec((1, Cp), lambda i: (0, 0)),     # resident bias
        ],
        out_specs=pl.BlockSpec((tm, Cp), lambda i: (i, 0)),
        out_shape=jax.ShapeDtypeStruct((M, Cp), out_dtype),
        compiler_params=_compiler_params(("parallel",)),
    )(x2d, w_io, b.reshape(1, Cp))
    return out2d.reshape(N, H, W, Cp)


# --------------------------------------------------------------------------- #
# 3x3 convolution (padding=1), H-tiled, with the top-down add fused in.
# --------------------------------------------------------------------------- #

def _pick_h_tile(H, W, C, Cout, act_itemsize, budget_bytes):
    """Largest divisor of H whose per-step working set fits the VMEM budget.
    Capped at H//2 (when H >= 16) so there are >= 2 H-tiles to shard across
    TensorCores on multi-core chips."""
    wp = W + 8
    per_row = (W * C * act_itemsize * 4            # double-buffered cur + pre blocks
               + 3 * wp * C * act_itemsize         # slab + two dx-shifted views
               + wp * Cout * 4                     # f32 accumulator
               + W * Cout * act_itemsize * 3)      # double-buffered out + cast copy
    fixed = (9 * C * Cout * act_itemsize           # resident weights
             + 8 * wp * C * act_itemsize           # halo + frame rows
             + 4 * W * C * act_itemsize)           # halo input pipeline buffers
    cap = max(1, (budget_bytes - fixed) // max(per_row, 1))
    cap = min(cap, max(8, H // 2))
    th = 1
    for d in range(1, H + 1):
        if H % d == 0 and d <= cap:
            th = d
    return th


def _halo_rows(x, th):
    """(N,H,W,C) -> (N, 2*nH, W, C): for every H-tile of `th` rows, the single
    row just above and just below it (zero rows at the image border)."""
    N, H, W, C = x.shape
    zrow = jnp.zeros((N, 1, W, C), x.dtype)
    above = jnp.concatenate([zrow, x[:, th - 1:H - 1:th]], axis=1)   # (N, nH, W, C)
    below = jnp.concatenate([x[:, th:H:th], zrow], axis=1)           # (N, nH, W, C)
    return jnp.stack([above, below], axis=2).reshape(N, -1, W, C)


def _make_conv3x3_kernel(fuse_add):
    """3x3 conv (padding=1) over one (TH, W, C) H-tile.

    The +-1 column shifts use a row-flattened, zero-framed slab: because the
    slab has >=1 trailing zero column per row, shifting the flattened row index
    by +-1 wraps into a zero exactly where the conv's implicit W-padding lives.
    Only the two shifted views are relayout copies; all 9 tap slices are
    aligned row ranges feeding 2-D MXU dots with f32 accumulation.
    """
    def kernel(*refs):
        if fuse_add:
            cur_ref, pre_ref, halo_ref, w_ref, b_ref, o_ref = refs
        else:
            cur_ref, halo_ref, w_ref, b_ref, o_ref = refs
        _, th, W, C = cur_ref.shape
        Cout = o_ref.shape[3]
        mm_dtype = w_ref.dtype
        Wp = W + 8                       # >= W+1 zero columns, keeps Wp % 8 == 0

        x = cur_ref[0].astype(jnp.float32)
        if fuse_add:
            x = x + pre_ref[0].astype(jnp.float32)       # fused top-down add
        x = x.astype(mm_dtype)                           # single down-cast

        hal = halo_ref[0].astype(mm_dtype)               # (2, W, C), already summed
        above = hal[0:1]
        below = hal[1:2]
        zrow = jnp.zeros((1, W, C), mm_dtype)
        slab = jnp.concatenate([zrow, above, x, below, zrow], axis=0)   # (th+4, W, C)
        # Zero-extend W by 8 columns (8-aligned concat): supplies the zeros that
        # the +-1 flattened-row shifts below wrap into at the image border.
        slab = jnp.concatenate(
            [slab, jnp.zeros((th + 4, 8, C), mm_dtype)], axis=1)        # (th+4, Wp, C)
        flat = slab.reshape((th + 4) * Wp, C)            # layout-trivial (Wp%8==0, C%128==0)

        # Three dx-shifted row views, built ONCE and reused across the dy taps
        # (2 sublane relayouts total; dx=1 view is aligned).
        g = [flat[Wp - 1 + dx: Wp - 1 + dx + (th + 2) * Wp] for dx in range(3)]

        acc = jnp.zeros((th * Wp, Cout), jnp.float32)
        for dx in range(3):
            for dy in range(3):
                patch = g[dx][dy * Wp:(dy + th) * Wp]    # aligned row-range slice
                acc = acc + jnp.dot(patch, w_ref[dy, dx],
                                    preferred_element_type=jnp.float32)

        out = (acc + b_ref[...]).reshape(1, th, Wp, Cout)
        o_ref[...] = out[:, :, :W, :].astype(o_ref.dtype)
    return kernel


def conv3x3(cur, pre, w_hwio, b, out_dtype):
    """3x3 conv, padding=1, over (cur + pre) (pre may be None, same resolution).
    cur/pre: (N,H,W,C); w: (3,3,C,Cp); b: (Cp,) float32."""
    N, H, W0, C = cur.shape
    Cout = w_hwio.shape[3]
    fuse_add = pre is not None

    # Keep the W (sublane) axis a multiple of 8 so every in-kernel slice,
    # reshape and store is tile-aligned (only triggers for tiny pyramid levels;
    # zero columns reproduce the conv's implicit padding exactly).
    W = _round_up(W0, 8)
    if W != W0:
        wpad = ((0, 0), (0, 0), (0, W - W0), (0, 0))
        cur = jnp.pad(cur, wpad)
        if fuse_add:
            pre = jnp.pad(pre, wpad)

    itemsize = jnp.dtype(out_dtype).itemsize
    th = _pick_h_tile(H, W, C, Cout, itemsize, _vmem_limit_bytes() * 3 // 5)
    nh = H // th

    # 1-row halo above/below every H-tile of the *summed* input (2 rows/tile),
    # built once in the wrapper so blocks never need to overlap.
    halo = _halo_rows(cur, th)
    if fuse_add:
        halo = (halo.astype(jnp.float32)
                + _halo_rows(pre, th).astype(jnp.float32)).astype(cur.dtype)

    kernel = _make_conv3x3_kernel(fuse_add)
    feat_spec = pl.BlockSpec((1, th, W, C), lambda n, h: (n, h, 0, 0))
    in_specs = [feat_spec]
    operands = [cur]
    if fuse_add:
        in_specs.append(feat_spec)
        operands.append(pre)
    in_specs += [
        pl.BlockSpec((1, 2, W, C), lambda n, h: (n, h, 0, 0)),      # halo rows
        # TODO(synk): pipeline_mode=pl.Buffered(1) on the two resident specs
        # below would reclaim their second pipeline buffer on 64 MiB-VMEM parts.
        pl.BlockSpec((3, 3, C, Cout), lambda n, h: (0, 0, 0, 0)),   # resident weights
        pl.BlockSpec((1, Cout), lambda n, h: (0, 0)),               # resident bias
    ]
    operands += [halo, w_hwio, b.reshape(1, Cout)]

    out = pl.pallas_call(
        kernel,
        grid=(N, nh),
        in_specs=in_specs,
        out_specs=pl.BlockSpec((1, th, W, Cout), lambda n, h: (n, h, 0, 0)),
        out_shape=jax.ShapeDtypeStruct((N, H, W, Cout), out_dtype),
        compiler_params=_compiler_params(("parallel", "parallel")),
    )(*operands)
    return out[:, :, :W0, :] if W != W0 else out


# ------------------------------ Glue (XLA) --------------------------------- #

def nearest_resize(x_nhwc, out_h, out_w):
    """F.interpolate(mode='nearest'): src = floor(dst * in / out), computed in
    exact integer arithmetic."""
    N, H, W, C = x_nhwc.shape
    if (H, W) == (out_h, out_w):
        return x_nhwc
    rows = (jnp.arange(out_h) * H) // out_h
    cols = (jnp.arange(out_w) * W) // out_w
    return x_nhwc[:, rows][:, :, cols]


# ------------------------------ FPN module --------------------------------- #

def init_fpn_params(key, in_channel_list, out_channel):
    """Deterministic parameter init (shapes/bounds match nn.Conv2d defaults)."""
    params = {"inner_w": [], "inner_b": [], "out_w": [], "out_b": []}
    for i, cin in enumerate(in_channel_list):
        k = jax.random.fold_in(key, i)
        k1, k2, k3, k4 = jax.random.split(k, 4)
        bound1 = 1.0 / (cin ** 0.5)
        params["inner_w"].append(
            jax.random.uniform(k1, (cin, out_channel), jnp.float32, -bound1, bound1))
        params["inner_b"].append(
            jax.random.uniform(k2, (out_channel,), jnp.float32, -bound1, bound1))
        bound3 = 1.0 / ((out_channel * 9) ** 0.5)
        params["out_w"].append(
            jax.random.uniform(k3, (3, 3, out_channel, out_channel),
                               jnp.float32, -bound3, bound3))
        params["out_b"].append(
            jax.random.uniform(k4, (out_channel,), jnp.float32, -bound3, bound3))
    return params


def _prepare_params(params, compute_dtype):
    """Zero-pad out_channel to a multiple of 128 (lane-dense stores, dense MXU N
    dim) and cast matmul weights to the compute dtype.  Biases stay f32 (added
    after f32 accumulation).  Padded channels remain exactly zero end-to-end."""
    out_channel = params["inner_w"][0].shape[1]
    pad = _round_up(out_channel, _LANE) - out_channel
    prep = {"inner_w": [], "inner_b": [], "out_w": [], "out_b": []}
    for wi, bi, wo, bo in zip(params["inner_w"], params["inner_b"],
                              params["out_w"], params["out_b"]):
        prep["inner_w"].append(jnp.pad(wi, ((0, 0), (0, pad))).astype(compute_dtype))
        prep["inner_b"].append(jnp.pad(bi, (0, pad)))
        prep["out_w"].append(
            jnp.pad(wo, ((0, 0), (0, 0), (0, pad), (0, pad))).astype(compute_dtype))
        prep["out_b"].append(jnp.pad(bo, (0, pad)))
    return prep, out_channel


def fpn_forward(xs_nchw, params, compute_dtype=jnp.float32):
    """Mirrors FPN.forward.  xs_nchw: list of NCHW feature maps (PyTorch order).
    Returns a list of NCHW float32 outputs, same length/order as the input."""
    prep, out_channel = _prepare_params(params, compute_dtype)
    # NCHW -> NHWC; cast once in the wrapper so the largest HBM reads (conv1x1
    # activations) are already in the MXU operand dtype (halves activation read
    # bytes in bf16 mode on v6e/v7x).  Accumulation stays f32 in-kernel.
    xs = [jnp.transpose(x, (0, 2, 3, 1)).astype(compute_dtype) for x in xs_nchw]
    head_output = []

    current = conv1x1(xs[-1], prep["inner_w"][-1], prep["inner_b"][-1], compute_dtype)
    head_output.append(conv3x3(current, None, prep["out_w"][-1],
                               prep["out_b"][-1], compute_dtype))

    for i in range(len(xs) - 2, -1, -1):
        pre = current
        current = conv1x1(xs[i], prep["inner_w"][i], prep["inner_b"][i], compute_dtype)
        H, W = current.shape[1], current.shape[2]
        # TODO(synk): fuse the exact-2x nearest upsample into conv3x3 (pass the
        # un-upsampled `pre` block and repeat rows/cols in-kernel) to drop this
        # full-resolution HBM round-trip; the index gather stays in XLA for now.
        pre_top_down = nearest_resize(pre, H, W)
        # top-down add is fused into the 3x3 conv kernel
        head_output.append(conv3x3(current, pre_top_down, prep["out_w"][i],
                                   prep["out_b"][i], compute_dtype))

    outs = list(reversed(head_output))
    # drop the channel padding, return NCHW float32
    return [jnp.transpose(o[..., :out_channel].astype(jnp.float32), (0, 3, 1, 2))
            for o in outs]


# --------------------------- Pure-JAX reference ----------------------------- #

def _ref_conv(x, w_hwio, b, padding):
    y = jax.lax.conv_general_dilated(
        x, w_hwio, window_strides=(1, 1), padding=padding,
        dimension_numbers=("NHWC", "HWIO", "NHWC"))
    return y + b.reshape(1, 1, 1, -1)


def fpn_forward_ref(xs_nchw, params):
    xs = [jnp.transpose(x, (0, 2, 3, 1)) for x in xs_nchw]

    def inner(x, i):
        w = params["inner_w"][i].reshape(1, 1, *params["inner_w"][i].shape)
        return _ref_conv(x, w, params["inner_b"][i], "VALID")

    def outer(x, i):
        return _ref_conv(x, params["out_w"][i], params["out_b"][i],
                         ((1, 1), (1, 1)))

    head_output = []
    current = inner(xs[-1], len(xs) - 1)
    head_output.append(outer(current, len(xs) - 1))
    for i in range(len(xs) - 2, -1, -1):
        pre = current
        current = inner(xs[i], i)
        H, W = current.shape[1], current.shape[2]
        head_output.append(outer(nearest_resize(pre, H, W) + current, i))
    outs = list(reversed(head_output))
    return [jnp.transpose(o, (0, 3, 1, 2)) for o in outs]


# --------------------------------- Main ------------------------------------- #

if __name__ == "__main__":
    key = jax.random.PRNGKey(0)

    in_channel_list = [4, 8, 16]
    out_channel = 8
    batch = 2
    spatials = [16, 8, 4]          # xs[-1] is the deepest / smallest level

    k_in, k_par = jax.random.split(key)
    xs = []
    for i, (cin, s) in enumerate(zip(in_channel_list, spatials)):
        xs.append(jax.random.normal(jax.random.fold_in(k_in, i),
                                    (batch, cin, s, s), jnp.float32))

    params = init_fpn_params(k_par, in_channel_list, out_channel)
    refs = [jax.block_until_ready(r) for r in fpn_forward_ref(xs, params)]

    # f32 path: tight check vs the pure-JAX reference (H=16 level exercises the
    # multi-tile grid with non-zero halo rows).
    outs = fpn_forward(xs, params, compute_dtype=jnp.float32)
    outs = [jax.block_until_ready(o) for o in outs]
    for o, r in zip(outs, refs):
        assert o.shape == r.shape, (o.shape, r.shape)
        assert jnp.allclose(o, r, atol=1e-4, rtol=1e-4), "f32 mismatch vs reference"

    # bf16 MXU-operand path (v6e/v7x optimization, f32 accumulation): loose check
    outs_bf16 = fpn_forward(xs, params, compute_dtype=jnp.bfloat16)
    outs_bf16 = [jax.block_until_ready(o) for o in outs_bf16]
    for o, r in zip(outs_bf16, refs):
        assert o.shape == r.shape, (o.shape, r.shape)
        assert jnp.allclose(o, r, atol=1e-1, rtol=1e-1), "bf16 mismatch vs reference"

    print("KERNEL_OK")
</pallas_src>

<mosaic_0001>
module attributes {stable_mosaic.version = 11 : i64} {
  func.func @_conv1x1_kernel(%arg0: i32, %arg1: memref<32x16xf32, #tpu.memory_space<vmem>>, %arg2: memref<16x128xf32, #tpu.memory_space<vmem>>, %arg3: memref<1x128xf32, #tpu.memory_space<vmem>>, %arg4: memref<32x128xf32, #tpu.memory_space<vmem>>) attributes {dimension_semantics = [#tpu.dimension_semantics<parallel>], iteration_bounds = array<i64: 1>, scalar_prefetch = 0 : i64, scratch_operands = 0 : i64, tpu.core_type = #tpu.core_type<tc>, window_params = [{transform_indices = @transform_0, window_bounds = array<i64: 32, 16>}, {pipeline_mode = #tpu.pipeline_mode<synchronous>, transform_indices = @transform_1, window_bounds = array<i64: 16, 128>}, {pipeline_mode = #tpu.pipeline_mode<synchronous>, transform_indices = @transform_2, window_bounds = array<i64: 1, 128>}, {transform_indices = @transform_3, window_bounds = array<i64: 32, 128>}]} {
    %c0 = arith.constant 0 : index
    %c0_0 = arith.constant 0 : index
    %0 = vector.load %arg1[%c0, %c0_0] : memref<32x16xf32, #tpu.memory_space<vmem>>, vector<32x16xf32>
    %c0_1 = arith.constant 0 : index
    %c0_2 = arith.constant 0 : index
    %1 = vector.load %arg2[%c0_1, %c0_2] : memref<16x128xf32, #tpu.memory_space<vmem>>, vector<16x128xf32>
    %cst = arith.constant dense<0.000000e+00> : vector<32x128xf32>
    %2 = tpu.matmul %0, %1, %cst {dimension_numbers = #tpu.dot_dimension_numbers<[1], [0], [0], [1], [0, 0, 1, 1], [], []>} : vector<32x16xf32>, vector<16x128xf32>, vector<32x128xf32> -> vector<32x128xf32>
    %c0_3 = arith.constant 0 : index
    %c0_4 = arith.constant 0 : index
    %3 = vector.load %arg3[%c0_3, %c0_4] : memref<1x128xf32, #tpu.memory_space<vmem>>, vector<1x128xf32>
    %4 = vector.broadcast %3 : vector<1x128xf32> to vector<32x128xf32>
    %5 = arith.addf %2, %4 : vector<32x128xf32>
    %c0_5 = arith.constant 0 : index
    %c0_6 = arith.constant 0 : index
    %6 = vector.load %arg4[%c0_5, %c0_6] : memref<32x128xf32, #tpu.memory_space<vmem>>, vector<32x128xf32>
    tpu.vector_store %arg4[%c0_5, %c0_6], %5 {strides = array<i32>} : memref<32x128xf32, #tpu.memory_space<vmem>>, vector<32x128xf32>,
    return
  }
  func.func @transform_0(%arg0: i32) -> (i32, i32) {
    %c0_i32 = arith.constant 0 : i32
    %c0_i32_0 = arith.constant 0 : i32
    return %arg0, %c0_i32 : i32, i32
  }
  func.func @transform_1(%arg0: i32) -> (i32, i32) {
    %c0_i32 = arith.constant 0 : i32
    %c0_i32_0 = arith.constant 0 : i32
    %c0_i32_1 = arith.constant 0 : i32
    return %c0_i32, %c0_i32_0 : i32, i32
  }
  func.func @transform_2(%arg0: i32) -> (i32, i32) {
    %c0_i32 = arith.constant 0 : i32
    %c0_i32_0 = arith.constant 0 : i32
    %c0_i32_1 = arith.constant 0 : i32
    return %c0_i32, %c0_i32_0 : i32, i32
  }
  func.func @transform_3(%arg0: i32) -> (i32, i32) {
    %c0_i32 = arith.constant 0 : i32
    %c0_i32_0 = arith.constant 0 : i32
    return %arg0, %c0_i32 : i32, i32
  }
}

</mosaic_0001>

<bundles_post_ra>
// kernel: tpu_custom_call.1
= control target key start
LH: loop header
LB: loop body
LE: loop exit
PB: predicated region body
PF: predicated region fallthrough
CT: control target
= control target key end

     0   :  { %vm25_vm0 = vcmask 130048   ;;  %s176_s0 = inlined_call_operand.vmem [shape: f32[32,16], index: 0, kind: input, shape index: {}]   ;;  %s177_s1 = inlined_call_operand.vmem [shape: f32[16,128], index: 1, kind: input, shape index: {}]   ;;  %s178_s2 = inlined_call_operand.vmem [shape: f32[1,128], index: 2, kind: input, shape index: {}]   ;;  %s179_s3 = inlined_call_operand.hbm [shape: f32[32,128], index: 3, kind: output, shape index: {}]  }
   0x1   :  { %v20_v0 = vld [vmem:[%s177_s1 + $0x8] sm:$0xff]  ;;  %v19_v1 = vld [vmem:[%s177_s1] sm:$0xff]  ;;  %v17_v2 = vld [vmem:[%s176_s0 + $0x10] sm:$0xff] }
   0x2   :  { %94 = vmatpush.msra.mxu2 %v20_v0  ;;  %95 = vmatpush.msra.mxu3 %v20_v0  ;;  %v18_v3 = vld [vmem:[%s176_s0 + $0x18] sm:$0xff] }
   0x3   :  { %52 = vmatpush.msra.mxu0 %v20_v0  ;;  %93 = vmatpush.msra.mxu1 %v20_v0 }
   0x4   :  { %8 = vsyncpa [#allocation3], 0  ;;  %97 = vmatpush.msra.mxu2 %v19_v1  ;;  %98 = vmatpush.msra.mxu3 %v19_v1  ;;  %v15_v4 = vld [vmem:[%s176_s0] sm:$0xff]  ;;  %v16_v5 = vld [vmem:[%s176_s0 + $0x8] sm:$0xff]  ;;  %s129_s25 = smov [#allocation2]   ;;  %s77_s0 = sshll.u32 %s179_s3, 4  ;;  %s78_s0 = int_to_ptr.hbm [resolvable:$true] %s77_s0 }
   0x5   :  { %91 = vmatmul.msk.f32.vlgmr.msra.gmra.mxu2 %vm25_vm0, %v17_v2  ;;  %92 = vmatmul.msk.f32.vlgmr.msra.gmra.mxu3 %vm25_vm0, %v18_v3  ;;  %v102_v6 = vld [vmem:[%s178_s2] ss:$0 sm:$0xff]  ;;  %s75_s26 = sshll.u32 %s129_s25, 4  ;;  %s130_s2 = smov 128   ;;  %s76_s26 = int_to_ptr.vmem [resolvable:$true] %s75_s26 }
   0x6   :  { %53 = vmatpush.msra.mxu0 %v19_v1  ;;  %96 = vmatpush.msra.mxu1 %v19_v1  ;;  %s131_s29 = smov 8  }
   0x7   :  { %89 = vmatmul.msk.f32.vlgmr.msra.gmra.mxu0 %vm25_vm0, %v15_v4  ;;  %90 = vmatmul.msk.f32.vlgmr.msra.gmra.mxu1 %vm25_vm0, %v16_v5 }
  0x84   :  { %v55_v7 = vpop.f32.mrf.mxu0  ;;  %v58_v8 = vpop.f32.mrf.mxu1 }
  0x85   :  { %v56_v9 = vadd.f32 %v102_v6, %v55_v7  ;;  %v59_v10 = vadd.f32 %v102_v6, %v58_v8 }
  0x87   :  { %67 = vst [vmem:[#allocation2] sm:$0xff] %v56_v9 }
  0x88   :  { %68 = vst [vmem:[#allocation2 + $0x8] sm:$0xff] %v59_v10  ;;  %v61_v11 = vpop.f32.mrf.mxu2  ;;  %v64_v12 = vpop.f32.mrf.mxu3 }
  0x89   :  { %v62_v13 = vadd.f32 %v102_v6, %v61_v11  ;;  %v65_v14 = vadd.f32 %v102_v6, %v64_v12 }
  0x8b   :  { %69 = vst [vmem:[#allocation2 + $0x10] sm:$0xff] %v62_v13 }
  0x8c   :  { %70 = vst [vmem:[#allocation2 + $0x18] sm:$0xff] %v65_v14 }
  0x8d   :  { %83 = dma.vmem_to_hbm [thread:$0]  %s76_s26, 512, %s78_s0, [#allocation3], %s130_s2, %s130_s2, %s131_s29  }
  0x8e   :  { %127 = dma.done.wait [#allocation3], 512  }
  0x8f   :  { %128 = vsyncadd [#allocation3], 4294966784 }
  0x90   :  { %88 = vsyncpa [#allocation3], 1 }

</bundles_post_ra>
